<compile_context>
chip_gen: v5e
topology: v5e:2x2
jax: 0.10.0
libtpu: 0.0.40
codegen_flags: <defaults>
</compile_context>

<pallas_src>
import functools

import jax
import jax.numpy as jnp
from jax.experimental import pallas as pl
from jax.experimental.pallas import tpu as pltpu

Q_NUM = 16            # synthetic q_num
BATCH = 8             # synthetic batch size
LANE = 128            # TPU lane width; all hidden dims are padded to this
LEAKY_SLOPE = 0.01    # F.leaky_relu default negative_slope
DROPOUT_PS = (0.1, 0.1, 0.1, 0.1, 0.01, 0.001)   # after fc1, fc4, fc6, fc8, fc10, fc12
N_TAIL = 6            # fc4, fc6, fc8, fc10, fc12, fcout


def _round_up(n, m):
    return ((n + m - 1) // m) * m


def _leaky_relu(v):
    return jnp.where(v >= 0.0, v, LEAKY_SLOPE * v)


def qgnn_kernel(x_ref, w_ref, b_ref, mask_ref, o_ref, *, q_num, k1):
    """Fused QuantumGNN forward, single invocation (no grid).

    x_ref    : (B, q_num+1) f32  -- features, last column = integer position index
    w_ref    : (k1 + 6*128, 128) -- packed zero-padded weights (fc1 fused with posEmbed)
    b_ref    : (8, 128)          -- packed zero-padded biases (rows 0..6 real, row 7 pad)
    mask_ref : (6, B, 128) f32   -- precomputed inverted-dropout multipliers
    o_ref    : (B, 128)          -- lane-dense output; real value in column 0
    """
    x_full = x_ref[...]
    batch = x_full.shape[0]

    feats = x_full[:, :q_num]                                 # (B, q)
    xpos = x_full[:, q_num:q_num + 1].astype(jnp.int32)       # (B, 1) = x[:, -1].int()

    # one-hot positional row: pos[i, xpos[i]] = 1
    cols = jax.lax.broadcasted_iota(jnp.int32, (batch, q_num), 1)
    pos = (cols == xpos).astype(jnp.float32)                  # (B, q)

    # fused first-layer input [feats | one_hot(pos)], zero-padded to k1 columns
    x_cat = jnp.concatenate([feats, pos], axis=1)             # (B, 2q)
    if k1 > 2 * q_num:
        x_cat = jnp.concatenate(
            [x_cat, jnp.zeros((batch, k1 - 2 * q_num), jnp.float32)], axis=1)

    biases = b_ref[...]                                       # (8, 128)

    # fused posEmbed + fc1 (one MXU pass), then leaky_relu + dropout(p=0.1)
    h = jnp.dot(x_cat, w_ref[0:k1, :], preferred_element_type=jnp.float32)
    h = h + biases[0:1, :]
    h = _leaky_relu(h) * mask_ref[0]

    # fc4 .. fc12, fcout — all padded to 128x128, one MXU pass each
    off = k1
    for li in range(1, N_TAIL + 1):
        w = w_ref[off:off + LANE, :]                          # static, sublane-aligned slice
        y = jnp.dot(h, w, preferred_element_type=jnp.float32) + biases[li:li + 1, :]
        if li < N_TAIL:
            h = _leaky_relu(y) * mask_ref[li]
        else:
            h = y                                             # fcout: no activation / dropout
        off += LANE

    o_ref[...] = h.astype(o_ref.dtype)


def init_params(key, q_num):
    """Deterministic PyTorch-Linear-style init: U(-1/sqrt(fan_in), 1/sqrt(fan_in)).
    Weights are returned already transposed to (in, out); biases are (1, out)."""
    dims = [(q_num, q_num), (q_num, 100), (100, 50), (50, 25),
            (25, 12), (12, 6), (6, 3), (3, 1)]
    params = []
    for din, dout in dims:
        key, kw, kb = jax.random.split(key, 3)
        bound = 1.0 / (din ** 0.5)
        W = jax.random.uniform(kw, (din, dout), jnp.float32, -bound, bound)
        b = jax.random.uniform(kb, (1, dout), jnp.float32, -bound, bound)
        params.append((W, b))
    return params


def pack_params(params, q_num):
    """Fold posEmbed into fc1 and pack all weights/biases into single aligned slabs."""
    (wpe, bpe), (w1, b1), (w4, b4), (w6, b6), (w8, b8), \
        (w10, b10), (w12, b12), (wout, bout) = params

    # (x + pos@Wpe + bpe) @ W1 + b1  ==  [x|pos] @ [W1 ; Wpe@W1] + (b1 + bpe@W1)
    w_fused = jnp.concatenate([w1, wpe @ w1], axis=0)         # (2q, 100)
    b_fused = b1 + bpe @ w1                                   # (1, 100)
    k1 = _round_up(2 * q_num, 8)

    def pad_w(w, rows):
        r, c = w.shape
        return jnp.pad(w, ((0, rows - r), (0, LANE - c)))

    def pad_b(b):
        return jnp.pad(b, ((0, 0), (0, LANE - b.shape[1])))

    slabs = [pad_w(w_fused, k1)] + [pad_w(w, LANE) for w in (w4, w6, w8, w10, w12, wout)]
    packed_w = jnp.concatenate(slabs, axis=0)                 # (k1 + 6*128, 128)

    rows = [pad_b(b_fused)] + [pad_b(b) for b in (b4, b6, b8, b10, b12, bout)]
    rows.append(jnp.zeros((1, LANE), jnp.float32))            # pad biases to 8 sublanes
    packed_b = jnp.concatenate(rows, axis=0)                  # (8, 128)
    return packed_w, packed_b, k1


def make_dropout_masks(key, batch, training=True):
    """Inverted-dropout multipliers (keep -> 1/(1-p), drop -> 0), drawn host-side.
    (pltpu.prng_random_bits is TPU-only and has no interpret/CPU lowering.)"""
    if not training:
        return jnp.ones((len(DROPOUT_PS), batch, LANE), jnp.float32)
    masks = []
    for p in DROPOUT_PS:
        key, sub = jax.random.split(key)
        keep = jax.random.bernoulli(sub, 1.0 - p, (batch, LANE))
        masks.append(keep.astype(jnp.float32) * (1.0 / (1.0 - p)))
    return jnp.stack(masks, axis=0)                           # (6, B, 128)


def quantum_gnn_forward(x, packed_w, packed_b, masks, q_num, k1):
    batch = x.shape[0]
    bpad = _round_up(batch, 8)
    if bpad != batch:                                         # keep sublane alignment
        x = jnp.pad(x, ((0, bpad - batch), (0, 0)))
        masks = jnp.pad(masks, ((0, 0), (0, bpad - batch), (0, 0)))

    kernel = functools.partial(qgnn_kernel, q_num=q_num, k1=k1)
    vmem = pl.BlockSpec(memory_space=pltpu.MemorySpace.VMEM)
    out_pad = pl.pallas_call(
        kernel,
        out_shape=jax.ShapeDtypeStruct((bpad, LANE), jnp.float32),
        in_specs=[vmem, vmem, vmem, vmem],
        out_specs=vmem,
    )(x, packed_w, packed_b, masks)
    return out_pad[:batch, :1]                                # (B, 1), value lives in lane 0


if __name__ == "__main__":
    key = jax.random.PRNGKey(0)
    k_feat, k_pos, k_params, k_drop = jax.random.split(key, 4)

    feats = jax.random.uniform(k_feat, (BATCH, Q_NUM), jnp.float32)
    xpos = jax.random.randint(k_pos, (BATCH, 1), 0, Q_NUM).astype(jnp.float32)
    x = jnp.concatenate([feats, xpos], axis=1)                # (B, q_num+1)

    params = init_params(k_params, Q_NUM)
    packed_w, packed_b, k1 = pack_params(params, Q_NUM)
    masks = make_dropout_masks(k_drop, BATCH, training=True)  # torch.dropout(train=True)

    out = quantum_gnn_forward(x, packed_w, packed_b, masks, Q_NUM, k1)
    out = jax.block_until_ready(out)
    assert out.shape == (BATCH, 1)
    print("KERNEL_OK")
</pallas_src>

<mosaic_0001>
module attributes {stable_mosaic.version = 11 : i64} {
  func.func @qgnn_kernel(%arg0: memref<8x17xf32, #tpu.memory_space<vmem>>, %arg1: memref<800x128xf32, #tpu.memory_space<vmem>>, %arg2: memref<8x128xf32, #tpu.memory_space<vmem>>, %arg3: memref<6x8x128xf32, #tpu.memory_space<vmem>>, %arg4: memref<8x128xf32, #tpu.memory_space<vmem>>) attributes {dimension_semantics = [], scalar_prefetch = 0 : i64, scratch_operands = 0 : i64, tpu.core_type = #tpu.core_type<tc>} {
    %c0 = arith.constant 0 : index
    %c0_0 = arith.constant 0 : index
    %0 = vector.load %arg0[%c0, %c0_0] : memref<8x17xf32, #tpu.memory_space<vmem>>, vector<8x17xf32>
    %1 = vector.extract_strided_slice %0 {offsets = [0, 0], sizes = [8, 16], strides = [1, 1]} : vector<8x17xf32> to vector<8x16xf32>
    %2 = vector.extract_strided_slice %0 {offsets = [0, 16], sizes = [8, 1], strides = [1, 1]} : vector<8x17xf32> to vector<8x1xf32>
    %3 = arith.fptosi %2 : vector<8x1xf32> to vector<8x1xi32>
    %4 = tpu.iota {dimensions = array<i32: 1>} : vector<8x16xi32>
    %5 = vector.broadcast %3 : vector<8x1xi32> to vector<8x16xi32>
    %6 = arith.cmpi eq, %4, %5 : vector<8x16xi32>
    %7 = arith.extui %6 : vector<8x16xi1> to vector<8x16xi32>
    %8 = arith.sitofp %7 : vector<8x16xi32> to vector<8x16xf32>
    %9 = tpu.concatenate %1, %8 in 1 : vector<8x16xf32>, vector<8x16xf32> -> vector<8x32xf32>
    %c0_1 = arith.constant 0 : index
    %c0_2 = arith.constant 0 : index
    %10 = vector.load %arg2[%c0_1, %c0_2] : memref<8x128xf32, #tpu.memory_space<vmem>>, vector<8x128xf32>
    %c0_3 = arith.constant 0 : index
    %c0_4 = arith.constant 0 : index
    %11 = vector.load %arg1[%c0_3, %c0_4] : memref<800x128xf32, #tpu.memory_space<vmem>>, vector<32x128xf32>
    %cst = arith.constant dense<0.000000e+00> : vector<8x128xf32>
    %12 = tpu.matmul %9, %11, %cst {dimension_numbers = #tpu.dot_dimension_numbers<[1], [0], [0], [1], [0, 0, 1, 1], [], []>} : vector<8x32xf32>, vector<32x128xf32>, vector<8x128xf32> -> vector<8x128xf32>
    %13 = vector.extract_strided_slice %10 {offsets = [0, 0], sizes = [1, 128], strides = [1, 1]} : vector<8x128xf32> to vector<1x128xf32>
    %14 = vector.broadcast %13 : vector<1x128xf32> to vector<8x128xf32>
    %15 = arith.addf %12, %14 : vector<8x128xf32>
    %cst_5 = arith.constant 0.000000e+00 : f32
    %16 = vector.broadcast %cst_5 : f32 to vector<8x128xf32>
    %17 = arith.cmpf oge, %15, %16 : vector<8x128xf32>
    %cst_6 = arith.constant 0.00999999977 : f32
    %18 = vector.broadcast %cst_6 : f32 to vector<8x128xf32>
    %19 = arith.mulf %18, %15 : vector<8x128xf32>
    %20 = arith.select %17, %15, %19 : vector<8x128xi1>, vector<8x128xf32>
    %c0_7 = arith.constant 0 : index
    %c0_8 = arith.constant 0 : index
    %c0_9 = arith.constant 0 : index
    %21 = vector.load %arg3[%c0_7, %c0_8, %c0_9] : memref<6x8x128xf32, #tpu.memory_space<vmem>>, vector<1x8x128xf32>
    %22 = vector.shape_cast %21 : vector<1x8x128xf32> to vector<8x128xf32>
    %23 = arith.mulf %20, %22 : vector<8x128xf32>
    %c32 = arith.constant 32 : index
    %c0_10 = arith.constant 0 : index
    %24 = vector.load %arg1[%c32, %c0_10] : memref<800x128xf32, #tpu.memory_space<vmem>>, vector<128x128xf32>
    %cst_11 = arith.constant dense<0.000000e+00> : vector<8x128xf32>
    %25 = tpu.matmul %23, %24, %cst_11 {dimension_numbers = #tpu.dot_dimension_numbers<[1], [0], [0], [1], [0, 0, 1, 1], [], []>} : vector<8x128xf32>, vector<128x128xf32>, vector<8x128xf32> -> vector<8x128xf32>
    %26 = vector.extract_strided_slice %10 {offsets = [1, 0], sizes = [1, 128], strides = [1, 1]} : vector<8x128xf32> to vector<1x128xf32>
    %27 = vector.broadcast %26 : vector<1x128xf32> to vector<8x128xf32>
    %28 = arith.addf %25, %27 : vector<8x128xf32>
    %cst_12 = arith.constant 0.000000e+00 : f32
    %29 = vector.broadcast %cst_12 : f32 to vector<8x128xf32>
    %30 = arith.cmpf oge, %28, %29 : vector<8x128xf32>
    %cst_13 = arith.constant 0.00999999977 : f32
    %31 = vector.broadcast %cst_13 : f32 to vector<8x128xf32>
    %32 = arith.mulf %31, %28 : vector<8x128xf32>
    %33 = arith.select %30, %28, %32 : vector<8x128xi1>, vector<8x128xf32>
    %c1 = arith.constant 1 : index
    %c0_14 = arith.constant 0 : index
    %c0_15 = arith.constant 0 : index
    %34 = vector.load %arg3[%c1, %c0_14, %c0_15] : memref<6x8x128xf32, #tpu.memory_space<vmem>>, vector<1x8x128xf32>
    %35 = vector.shape_cast %34 : vector<1x8x128xf32> to vector<8x128xf32>
    %36 = arith.mulf %33, %35 : vector<8x128xf32>
    %c160 = arith.constant 160 : index
    %c0_16 = arith.constant 0 : index
    %37 = vector.load %arg1[%c160, %c0_16] : memref<800x128xf32, #tpu.memory_space<vmem>>, vector<128x128xf32>
    %cst_17 = arith.constant dense<0.000000e+00> : vector<8x128xf32>
    %38 = tpu.matmul %36, %37, %cst_17 {dimension_numbers = #tpu.dot_dimension_numbers<[1], [0], [0], [1], [0, 0, 1, 1], [], []>} : vector<8x128xf32>, vector<128x128xf32>, vector<8x128xf32> -> vector<8x128xf32>
    %39 = vector.extract_strided_slice %10 {offsets = [2, 0], sizes = [1, 128], strides = [1, 1]} : vector<8x128xf32> to vector<1x128xf32>
    %40 = vector.broadcast %39 : vector<1x128xf32> to vector<8x128xf32>
    %41 = arith.addf %38, %40 : vector<8x128xf32>
    %cst_18 = arith.constant 0.000000e+00 : f32
    %42 = vector.broadcast %cst_18 : f32 to vector<8x128xf32>
    %43 = arith.cmpf oge, %41, %42 : vector<8x128xf32>
    %cst_19 = arith.constant 0.00999999977 : f32
    %44 = vector.broadcast %cst_19 : f32 to vector<8x128xf32>
    %45 = arith.mulf %44, %41 : vector<8x128xf32>
    %46 = arith.select %43, %41, %45 : vector<8x128xi1>, vector<8x128xf32>
    %c2 = arith.constant 2 : index
    %c0_20 = arith.constant 0 : index
    %c0_21 = arith.constant 0 : index
    %47 = vector.load %arg3[%c2, %c0_20, %c0_21] : memref<6x8x128xf32, #tpu.memory_space<vmem>>, vector<1x8x128xf32>
    %48 = vector.shape_cast %47 : vector<1x8x128xf32> to vector<8x128xf32>
    %49 = arith.mulf %46, %48 : vector<8x128xf32>
    %c288 = arith.constant 288 : index
    %c0_22 = arith.constant 0 : index
    %50 = vector.load %arg1[%c288, %c0_22] : memref<800x128xf32, #tpu.memory_space<vmem>>, vector<128x128xf32>
    %cst_23 = arith.constant dense<0.000000e+00> : vector<8x128xf32>
    %51 = tpu.matmul %49, %50, %cst_23 {dimension_numbers = #tpu.dot_dimension_numbers<[1], [0], [0], [1], [0, 0, 1, 1], [], []>} : vector<8x128xf32>, vector<128x128xf32>, vector<8x128xf32> -> vector<8x128xf32>
    %52 = vector.extract_strided_slice %10 {offsets = [3, 0], sizes = [1, 128], strides = [1, 1]} : vector<8x128xf32> to vector<1x128xf32>
    %53 = vector.broadcast %52 : vector<1x128xf32> to vector<8x128xf32>
    %54 = arith.addf %51, %53 : vector<8x128xf32>
    %cst_24 = arith.constant 0.000000e+00 : f32
    %55 = vector.broadcast %cst_24 : f32 to vector<8x128xf32>
    %56 = arith.cmpf oge, %54, %55 : vector<8x128xf32>
    %cst_25 = arith.constant 0.00999999977 : f32
    %57 = vector.broadcast %cst_25 : f32 to vector<8x128xf32>
    %58 = arith.mulf %57, %54 : vector<8x128xf32>
    %59 = arith.select %56, %54, %58 : vector<8x128xi1>, vector<8x128xf32>
    %c3 = arith.constant 3 : index
    %c0_26 = arith.constant 0 : index
    %c0_27 = arith.constant 0 : index
    %60 = vector.load %arg3[%c3, %c0_26, %c0_27] : memref<6x8x128xf32, #tpu.memory_space<vmem>>, vector<1x8x128xf32>
    %61 = vector.shape_cast %60 : vector<1x8x128xf32> to vector<8x128xf32>
    %62 = arith.mulf %59, %61 : vector<8x128xf32>
    %c416 = arith.constant 416 : index
    %c0_28 = arith.constant 0 : index
    %63 = vector.load %arg1[%c416, %c0_28] : memref<800x128xf32, #tpu.memory_space<vmem>>, vector<128x128xf32>
    %cst_29 = arith.constant dense<0.000000e+00> : vector<8x128xf32>
    %64 = tpu.matmul %62, %63, %cst_29 {dimension_numbers = #tpu.dot_dimension_numbers<[1], [0], [0], [1], [0, 0, 1, 1], [], []>} : vector<8x128xf32>, vector<128x128xf32>, vector<8x128xf32> -> vector<8x128xf32>
    %65 = vector.extract_strided_slice %10 {offsets = [4, 0], sizes = [1, 128], strides = [1, 1]} : vector<8x128xf32> to vector<1x128xf32>
    %66 = vector.broadcast %65 : vector<1x128xf32> to vector<8x128xf32>
    %67 = arith.addf %64, %66 : vector<8x128xf32>
    %cst_30 = arith.constant 0.000000e+00 : f32
    %68 = vector.broadcast %cst_30 : f32 to vector<8x128xf32>
    %69 = arith.cmpf oge, %67, %68 : vector<8x128xf32>
    %cst_31 = arith.constant 0.00999999977 : f32
    %70 = vector.broadcast %cst_31 : f32 to vector<8x128xf32>
    %71 = arith.mulf %70, %67 : vector<8x128xf32>
    %72 = arith.select %69, %67, %71 : vector<8x128xi1>, vector<8x128xf32>
    %c4 = arith.constant 4 : index
    %c0_32 = arith.constant 0 : index
    %c0_33 = arith.constant 0 : index
    %73 = vector.load %arg3[%c4, %c0_32, %c0_33] : memref<6x8x128xf32, #tpu.memory_space<vmem>>, vector<1x8x128xf32>
    %74 = vector.shape_cast %73 : vector<1x8x128xf32> to vector<8x128xf32>
    %75 = arith.mulf %72, %74 : vector<8x128xf32>
    %c544 = arith.constant 544 : index
    %c0_34 = arith.constant 0 : index
    %76 = vector.load %arg1[%c544, %c0_34] : memref<800x128xf32, #tpu.memory_space<vmem>>, vector<128x128xf32>
    %cst_35 = arith.constant dense<0.000000e+00> : vector<8x128xf32>
    %77 = tpu.matmul %75, %76, %cst_35 {dimension_numbers = #tpu.dot_dimension_numbers<[1], [0], [0], [1], [0, 0, 1, 1], [], []>} : vector<8x128xf32>, vector<128x128xf32>, vector<8x128xf32> -> vector<8x128xf32>
    %78 = vector.extract_strided_slice %10 {offsets = [5, 0], sizes = [1, 128], strides = [1, 1]} : vector<8x128xf32> to vector<1x128xf32>
    %79 = vector.broadcast %78 : vector<1x128xf32> to vector<8x128xf32>
    %80 = arith.addf %77, %79 : vector<8x128xf32>
    %cst_36 = arith.constant 0.000000e+00 : f32
    %81 = vector.broadcast %cst_36 : f32 to vector<8x128xf32>
    %82 = arith.cmpf oge, %80, %81 : vector<8x128xf32>
    %cst_37 = arith.constant 0.00999999977 : f32
    %83 = vector.broadcast %cst_37 : f32 to vector<8x128xf32>
    %84 = arith.mulf %83, %80 : vector<8x128xf32>
    %85 = arith.select %82, %80, %84 : vector<8x128xi1>, vector<8x128xf32>
    %c5 = arith.constant 5 : index
    %c0_38 = arith.constant 0 : index
    %c0_39 = arith.constant 0 : index
    %86 = vector.load %arg3[%c5, %c0_38, %c0_39] : memref<6x8x128xf32, #tpu.memory_space<vmem>>, vector<1x8x128xf32>
    %87 = vector.shape_cast %86 : vector<1x8x128xf32> to vector<8x128xf32>
    %88 = arith.mulf %85, %87 : vector<8x128xf32>
    %c672 = arith.constant 672 : index
    %c0_40 = arith.constant 0 : index
    %89 = vector.load %arg1[%c672, %c0_40] : memref<800x128xf32, #tpu.memory_space<vmem>>, vector<128x128xf32>
    %cst_41 = arith.constant dense<0.000000e+00> : vector<8x128xf32>
    %90 = tpu.matmul %88, %89, %cst_41 {dimension_numbers = #tpu.dot_dimension_numbers<[1], [0], [0], [1], [0, 0, 1, 1], [], []>} : vector<8x128xf32>, vector<128x128xf32>, vector<8x128xf32> -> vector<8x128xf32>
    %91 = vector.extract_strided_slice %10 {offsets = [6, 0], sizes = [1, 128], strides = [1, 1]} : vector<8x128xf32> to vector<1x128xf32>
    %92 = vector.broadcast %91 : vector<1x128xf32> to vector<8x128xf32>
    %93 = arith.addf %90, %92 : vector<8x128xf32>
    %c0_42 = arith.constant 0 : index
    %c0_43 = arith.constant 0 : index
    %94 = vector.load %arg4[%c0_42, %c0_43] : memref<8x128xf32, #tpu.memory_space<vmem>>, vector<8x128xf32>
    tpu.vector_store %arg4[%c0_42, %c0_43], %93 {strides = array<i32>} : memref<8x128xf32, #tpu.memory_space<vmem>>, vector<8x128xf32>,
    return
  }
}

</mosaic_0001>

<bundles_post_ra>
// kernel: tpu_custom_call.1
= control target key start
LH: loop header
LB: loop body
LE: loop exit
PB: predicated region body
PF: predicated region fallthrough
CT: control target
= control target key end

     0   :  { %9 = vsyncpa [#allocation3], 0  ;;  %s605_s0 = inlined_call_operand.hbm [shape: f32[8,17], index: 0, kind: input, shape index: {}]   ;;  %s606_s1 = inlined_call_operand.hbm [shape: f32[800,128], index: 1, kind: input, shape index: {}]   ;;  %s607_s2 = inlined_call_operand.hbm [shape: f32[8,128], index: 2, kind: input, shape index: {}]   ;;  %s608_s3 = inlined_call_operand.hbm [shape: f32[6,8,128], index: 3, kind: input, shape index: {}]   ;;  %s609_s4 = inlined_call_operand.hbm [shape: f32[8,128], index: 4, kind: output, shape index: {}]  }
   0x1   :  { %10 = vsyncpa [#allocation6], 0 }
   0x2   :  { %11 = vsyncpa [#allocation9], 0  ;;  %s28_s17 = sshll.u32 %s606_s1, 4  ;;  %s29_s17 = int_to_ptr.hbm [resolvable:$true] %s28_s17 }
   0x3   :  { %12 = vsyncpa [#allocation4], 0  ;;  %s546_s18 = smov [#allocation5]   ;;  %s18_s22 = sshll.u32 %s605_s0, 4  ;;  %s19_s22 = int_to_ptr.hbm [resolvable:$true] %s18_s22 }
   0x4   :  { %s30_s19 = sshll.u32 %s546_s18, 4  ;;  %s547_s23 = smov 128   ;;  %s31_s19 = int_to_ptr.vmem [resolvable:$true] %s30_s19 }
   0x5   :  { %s548_s24 = smov 8   ;;  %s549_s25 = smov [#allocation2]  }
   0x6   :  { %36 = dma.hbm_to_vmem [thread:$0]  %s29_s17, 12800, %s31_s19, [#allocation6], %s547_s23, %s547_s23, %s548_s24  }
   0x7   :  { %s20_s26 = sshll.u32 %s549_s25, 4  ;;  %s42_s29 = sshll.u32 %s607_s2, 4  ;;  %s21_s26 = int_to_ptr.vmem [resolvable:$true] %s20_s26  ;;  %s43_s29 = int_to_ptr.hbm [resolvable:$true] %s42_s29 }
   0x8   :  { %23 = dma.hbm_to_vmem [thread:$0]  %s19_s22, 128, %s21_s26, [#allocation3]  }
   0x9   :  { %s52_s5 = sshll.u32 %s608_s3, 4  ;;  %s550_s6 = smov [#allocation7]   ;;  %s53_s5 = int_to_ptr.hbm [resolvable:$true] %s52_s5 }
   0xa   :  { %s44_s7 = sshll.u32 %s550_s6, 4  ;;  %s551_s0 = smov [#allocation8]   ;;  %s45_s7 = int_to_ptr.vmem [resolvable:$true] %s44_s7 }
   0xb   :  { %47 = dma.hbm_to_vmem [thread:$0]  %s43_s29, 128, %s45_s7, [#allocation6]  }
   0xc   :  { %s54_s8 = sshll.u32 %s551_s0, 4  ;;  %s55_s8 = int_to_ptr.vmem [resolvable:$true] %s54_s8 }
   0xd   :  { %60 = dma.hbm_to_vmem [thread:$0]  %s53_s5, 768, %s55_s8, [#allocation9], %s547_s23, %s547_s23, %s548_s24  }
   0xe   :  { %538 = dma.done.wait [#allocation3], 128  }
   0xf   :  { %539 = vsyncadd [#allocation3], 4294967168 }
  0x10   :  { %540 = dma.done.wait [#allocation6], 12928  }
  0x11   :  { %541 = vsyncadd [#allocation6], 4294954368 }
  0x12   :  { %542 = dma.done.wait [#allocation9], 768  }
  0x13   :  { %543 = vsyncadd [#allocation9], 4294966528  ;;  %v552_v0 = vmov 16   ;;  %v77_v1 = vld [vmem:[#allocation2] sm:$0xff]  ;;  %v96_v7 = vld [vmem:[#allocation5 + $0x10] sm:$0xff]  ;;  %v79_v9 = vlaneseq  ;;  %v553_v12 = vmov 0.0  }
  0x14   :  { %417 = vset.pattern.permute.xlu0 %v552_v0  ;;  %vm402_vm0 = vcmp.lt.s32.totalorder %v77_v1, 0  ;;  %v403_v2 = vceil.f32 %v77_v1  ;;  %v404_v3 = vfloor.f32 %v77_v1  ;;  %v97_v6 = vld [vmem:[#allocation5 + $0x18] sm:$0xff]  ;;  %v95_v8 = vld [vmem:[#allocation5 + $0x8] sm:$0xff]  ;;  %s554_s2 = smov 16   ;;  %v94_v14 = vld [vmem:[#allocation5] sm:$0xff]  ;;  %vm91_vm2 = vcmask 130048  }
  0x15   :  { %115 = vmatpush.msra.mxu0 %v97_v6  ;;  %v80_v10 = vand.u32 127, %v79_v9  ;;  %v143_v15 = vld [vmem:[#allocation5 + $0x98] sm:$0xff]  ;;  %v142_v16 = vld [vmem:[#allocation5 + $0x90] sm:$0xff]  ;;  %v141_v17 = vld [vmem:[#allocation5 + $0x88] sm:$0xff]  ;;  %vm99_vm3 = vcmask 261120   ;;  %s555_s3 = smov [#allocation10]  }
  0x16   :  { %v405_v4 = vsel %vm402_vm0, %v403_v2, %v404_v3  ;;  %145 = vmatpush.msra.mxu1 %v143_v15  ;;  %v140_v18 = vld [vmem:[#allocation5 + $0x80] sm:$0xff]  ;;  %v139_v19 = vld [vmem:[#allocation5 + $0x78] sm:$0xff]  ;;  %v138_v20 = vld [vmem:[#allocation5 + $0x70] sm:$0xff]  ;;  %s386_s9 = sshll.u32 %s555_s3, 4  ;;  %s388_s12 = sshll.u32 %s609_s4, 4  ;;  %s387_s9 = int_to_ptr.vmem [resolvable:$true] %s386_s9  ;;  %s389_s12 = int_to_ptr.hbm [resolvable:$true] %s388_s12 }
  0x17   :  { %v406_v5 = vcvt.f32.s32 %v405_v4  ;;  %116 = vmatpush.msra.mxu0 %v96_v7  ;;  %v137_v21 = vld [vmem:[#allocation5 + $0x68] sm:$0xff]  ;;  %v136_v22 = vld [vmem:[#allocation5 + $0x60] sm:$0xff]  ;;  %v135_v23 = vld [vmem:[#allocation5 + $0x58] sm:$0xff] }
  0x18   :  { %146 = vmatpush.msra.mxu1 %v142_v16  ;;  %v134_v24 = vld [vmem:[#allocation5 + $0x50] sm:$0xff]  ;;  %v133_v25 = vld [vmem:[#allocation5 + $0x48] sm:$0xff]  ;;  %v132_v26 = vld [vmem:[#allocation5 + $0x40] sm:$0xff] }
  0x19   :  { %82 = vperm.xlu0 %417, %v406_v5   ;;  %117 = vmatpush.msra.mxu0 %v95_v8  ;;  %v131_v29 = vld [vmem:[#allocation5 + $0x38] sm:$0xff]  ;;  %v130_v30 = vld [vmem:[#allocation5 + $0x30] sm:$0xff]  ;;  %v129_v31 = vld [vmem:[#allocation5 + $0x28] sm:$0xff] }
  0x1a   :  { %147 = vmatpush.msra.mxu1 %v141_v17  ;;  %v128_v32 = vld [vmem:[#allocation5 + $0x20] sm:$0xff]  ;;  %v186_v33 = vld [vmem:[#allocation5 + $0x118] sm:$0xff]  ;;  %v185_v34 = vld [vmem:[#allocation5 + $0x110] sm:$0xff] }
  0x1b   :  { %118 = vmatpush.msra.mxu0 %v94_v14  ;;  %188 = vmatpush.msra.mxu2 %v186_v33  ;;  %v184_v35 = vld [vmem:[#allocation5 + $0x108] sm:$0xff]  ;;  %v183_v36 = vld [vmem:[#allocation5 + $0x100] sm:$0xff]  ;;  %v182_v37 = vld [vmem:[#allocation5 + $0xf8] sm:$0xff] }
  0x1c   :  { %148 = vmatpush.msra.mxu1 %v140_v18  ;;  %v181_v38 = vld [vmem:[#allocation5 + $0xf0] sm:$0xff]  ;;  %v180_v39 = vld [vmem:[#allocation5 + $0xe8] sm:$0xff]  ;;  %v179_v40 = vld [vmem:[#allocation5 + $0xe0] sm:$0xff] }
  0x1d   :  { %189 = vmatpush.msra.mxu2 %v185_v34  ;;  %v178_v41 = vld [vmem:[#allocation5 + $0xd8] sm:$0xff]  ;;  %v177_v42 = vld [vmem:[#allocation5 + $0xd0] sm:$0xff]  ;;  %v593_v43 = vld [vmem:[#allocation7] sm:$0xff] }
  0x1e   :  { %149 = vmatpush.msra.mxu1 %v139_v19  ;;  %v176_v44 = vld [vmem:[#allocation5 + $0xc8] sm:$0xff]  ;;  %v175_v45 = vld [vmem:[#allocation5 + $0xc0] sm:$0xff]  ;;  %v98_v46 = vperm.slane %v593_v43, 0  ;;  %v174_v53 = vld [vmem:[#allocation5 + $0xb8] sm:$0xff]  ;;  %v144_v5 = vperm.slane %v593_v43, 1 }
  0x1f   :  { %190 = vmatpush.msra.mxu2 %v184_v35  ;;  %v126_v50 = vld [vmem:[#allocation8] sm:$0xff]  ;;  %v173_v54 = vld [vmem:[#allocation5 + $0xb0] sm:$0xff]  ;;  %v171_v56 = vld [vmem:[#allocation5 + $0xa0] sm:$0xff] }
  0x20   :  { %150 = vmatpush.msra.mxu1 %v138_v20  ;;  %v172_v55 = vld [vmem:[#allocation5 + $0xa8] sm:$0xff]  ;;  %v229_v57 = vld [vmem:[#allocation5 + $0x198] sm:$0xff]  ;;  %v228_v58 = vld [vmem:[#allocation5 + $0x190] sm:$0xff] }
  0x21   :  { %191 = vmatpush.msra.mxu2 %v183_v36  ;;  %231 = vmatpush.msra.mxu3 %v229_v57  ;;  %v227_v59 = vld [vmem:[#allocation5 + $0x188] sm:$0xff]  ;;  %v226_v60 = vld [vmem:[#allocation5 + $0x180] sm:$0xff]  ;;  %v225_v61 = vld [vmem:[#allocation5 + $0x178] sm:$0xff] }
  0x22   :  { %151 = vmatpush.msra.mxu1 %v137_v21  ;;  %v224_v62 = vld [vmem:[#allocation5 + $0x170] sm:$0xff]  ;;  %v223_v63 = vld [vmem:[#allocation5 + $0x168] sm:$0xff]  ;;  %v222_v0 = vld [vmem:[#allocation5 + $0x160] sm:$0xff] }
  0x23   :  { %192 = vmatpush.msra.mxu2 %v182_v37  ;;  %232 = vmatpush.msra.mxu3 %v228_v58  ;;  %v220_v2 = vld [vmem:[#allocation5 + $0x150] sm:$0xff]  ;;  %v219_v3 = vld [vmem:[#allocation5 + $0x148] sm:$0xff]  ;;  %v218_v4 = vld [vmem:[#allocation5 + $0x140] sm:$0xff] }
  0x24   :  { %152 = vmatpush.msra.mxu1 %v136_v22  ;;  %v169_v9 = vld [vmem:[#allocation8 + $0x8] sm:$0xff]  ;;  %v215_v14 = vld [vmem:[#allocation5 + $0x128] sm:$0xff]  ;;  %v214_v15 = vld [vmem:[#allocation5 + $0x120] sm:$0xff] }
  0x25   :  { %193 = vmatpush.msra.mxu2 %v181_v38  ;;  %233 = vmatpush.msra.mxu3 %v227_v59  ;;  %v272_v16 = vld [vmem:[#allocation5 + $0x218] sm:$0xff]  ;;  %v271_v17 = vld [vmem:[#allocation5 + $0x210] sm:$0xff]  ;;  %v270_v18 = vld [vmem:[#allocation5 + $0x208] sm:$0xff] }
  0x26   :  { %153 = vmatpush.msra.mxu1 %v135_v23  ;;  %274 = vmatpush.msrb.mxu0 %v272_v16  ;;  %v269_v19 = vld [vmem:[#allocation5 + $0x200] sm:$0xff]  ;;  %v268_v20 = vld [vmem:[#allocation5 + $0x1f8] sm:$0xff]  ;;  %v267_v21 = vld [vmem:[#allocation5 + $0x1f0] sm:$0xff] }
  0x27   :  { %194 = vmatpush.msra.mxu2 %v180_v39  ;;  %234 = vmatpush.msra.mxu3 %v226_v60  ;;  %v266_v22 = vld [vmem:[#allocation5 + $0x1e8] sm:$0xff]  ;;  %v265_v23 = vld [vmem:[#allocation5 + $0x1e0] sm:$0xff]  ;;  %v260_v35 = vld [vmem:[#allocation5 + $0x1b8] sm:$0xff] }
  0x28   :  { %154 = vmatpush.msra.mxu1 %v134_v24  ;;  %275 = vmatpush.msrb.mxu0 %v271_v17  ;;  %v264_v24 = vld [vmem:[#allocation5 + $0x1d8] sm:$0xff]  ;;  %v259_v36 = vld [vmem:[#allocation5 + $0x1b0] sm:$0xff]  ;;  %v258_v37 = vld [vmem:[#allocation5 + $0x1a8] sm:$0xff] }
  0x29   :  { %195 = vmatpush.msra.mxu2 %v179_v40  ;;  %235 = vmatpush.msra.mxu3 %v225_v61  ;;  %v257_v38 = vld [vmem:[#allocation5 + $0x1a0] sm:$0xff]  ;;  %v315_v39 = vld [vmem:[#allocation5 + $0x298] sm:$0xff]  ;;  %v314_v40 = vld [vmem:[#allocation5 + $0x290] sm:$0xff] }
  0x2a   :  { %155 = vmatpush.msra.mxu1 %v133_v25  ;;  %276 = vmatpush.msrb.mxu0 %v270_v18  ;;  %v263_v25 = vld [vmem:[#allocation5 + $0x1d0] sm:$0xff]  ;;  %v303_v59 = vld [vmem:[#allocation5 + $0x238] sm:$0xff]  ;;  %v301_v61 = vld [vmem:[#allocation5 + $0x228] sm:$0xff] }
  0x2b   :  { %196 = vmatpush.msra.mxu2 %v178_v41  ;;  %236 = vmatpush.msra.mxu3 %v224_v62  ;;  %v313_v41 = vld [vmem:[#allocation5 + $0x288] sm:$0xff]  ;;  %v302_v60 = vld [vmem:[#allocation5 + $0x230] sm:$0xff]  ;;  %v300_v62 = vld [vmem:[#allocation5 + $0x220] sm:$0xff] }
  0x2c   :  { %156 = vmatpush.msra.mxu1 %v132_v26  ;;  %277 = vmatpush.msrb.mxu0 %v269_v19  ;;  %v262_v26 = vld [vmem:[#allocation5 + $0x1c8] sm:$0xff]  ;;  %v346_v18 = vld [vmem:[#allocation5 + $0x2b8] sm:$0xff]  ;;  %v345_v19 = vld [vmem:[#allocation5 + $0x2b0] sm:$0xff] }
  0x2d   :  { %197 = vmatpush.msra.mxu2 %v177_v42  ;;  %237 = vmatpush.msra.mxu3 %v223_v63  ;;  %v312_v42 = vld [vmem:[#allocation5 + $0x280] sm:$0xff]  ;;  %v358_v63 = vld [vmem:[#allocation5 + $0x318] sm:$0xff] }
  0x2e   :  { %157 = vmatpush.msra.mxu1 %v131_v29  ;;  %278 = vmatpush.msrb.mxu0 %v268_v20  ;;  %v344_v20 = vld [vmem:[#allocation5 + $0x2a8] sm:$0xff] }
  0x2f   :  { %198 = vmatpush.msra.mxu2 %v176_v44  ;;  %238 = vmatpush.msra.mxu3 %v222_v0  ;;  %v311_v44 = vld [vmem:[#allocation5 + $0x278] sm:$0xff]  ;;  %v357_v0 = vld [vmem:[#allocation5 + $0x310] sm:$0xff] }
  0x30   :  { %158 = vmatpush.msra.mxu1 %v130_v30  ;;  %279 = vmatpush.msrb.mxu0 %v267_v21  ;;  %v343_v21 = vld [vmem:[#allocation5 + $0x2a0] sm:$0xff] }
  0x31   :  { %199 = vmatpush.msra.mxu2 %v175_v45  ;;  %v310_v45 = vld [vmem:[#allocation5 + $0x270] sm:$0xff] }
  0x32   :  { %159 = vmatpush.msra.mxu1 %v129_v31  ;;  %280 = vmatpush.msrb.mxu0 %v266_v22  ;;  %v316_v22 = vperm.slane %v593_v43, 5 }
  0x33   :  { %200 = vmatpush.msra.mxu2 %v174_v53 }
  0x34   :  { %160 = vmatpush.msra.mxu1 %v128_v32  ;;  %281 = vmatpush.msrb.mxu0 %v265_v23  ;;  %v212_v32 = vld [vmem:[#allocation8 + $0x10] sm:$0xff] }
  0x35   :  { %201 = vmatpush.msra.mxu2 %v173_v54 }
  0x36   :  { %282 = vmatpush.msrb.mxu0 %v264_v24  ;;  %317 = vmatpush.msrb.mxu1 %v315_v39 }
  0x37   :  { %202 = vmatpush.msra.mxu2 %v172_v55 }
  0x38   :  { %283 = vmatpush.msrb.mxu0 %v263_v25  ;;  %318 = vmatpush.msrb.mxu1 %v314_v40 }
  0x39   :  { %203 = vmatpush.msra.mxu2 %v171_v56  ;;  %v255_v56 = vld [vmem:[#allocation8 + $0x18] sm:$0xff] }
  0x3a   :  { %284 = vmatpush.msrb.mxu0 %v262_v26  ;;  %319 = vmatpush.msrb.mxu1 %v313_v41  ;;  %v341_v26 = vld [vmem:[#allocation8 + $0x28] sm:$0xff] }
  0x3b   :  { %360 = vmatpush.msrb.mxu2 %v358_v63 }
  0x3c   :  { %320 = vmatpush.msrb.mxu1 %v312_v42 }
  0x3d   :  { %361 = vmatpush.msrb.mxu2 %v357_v0 }
  0x3e   :  { %321 = vmatpush.msrb.mxu1 %v311_v44 }
  0x40   :  { %322 = vmatpush.msrb.mxu1 %v310_v45 }
  0x8b   :  { %v83_v11 = vpop.permute.xlu0 %82 }
  0x8c   :  { %vm84_vm1 = vcmp.eq.s32.totalorder %v80_v10, %v83_v11 }
  0x8d   :  { %v400_v13 = vsel %vm84_vm1, 1.0, %v553_v12  ;;  %v217_v12 = vld [vmem:[#allocation5 + $0x138] sm:$0xff] }
  0x8e   :  { %88 = vrot.lane.b32.xlu0 %v400_v13, %s554_s2  ;;  %v216_v13 = vld [vmem:[#allocation5 + $0x130] sm:$0xff] }
 0x100   :  { %v89_v27 = vpop.permute.xlu0 %88 }
 0x101   :  { %v92_v28 = vsel %vm91_vm2, %v77_v1, %v89_v27  ;;  %v221_v1 = vld [vmem:[#allocation5 + $0x158] sm:$0xff]  ;;  %v261_v27 = vld [vmem:[#allocation5 + $0x1c0] sm:$0xff] }
 0x102   :  { %401 = vmatmul.msk.f32.vlgmr.msra.gmra.mxu0 %vm99_vm3, %v92_v28  ;;  %239 = vmatpush.msra.mxu3 %v221_v1  ;;  %v187_v28 = vperm.slane %v593_v43, 2  ;;  %v356_v1 = vld [vmem:[#allocation5 + $0x308] sm:$0xff] }
 0x103   :  { %285 = vmatpush.msrb.mxu0 %v261_v27  ;;  %362 = vmatpush.msrb.mxu2 %v356_v1 }
 0x104   :  { %240 = vmatpush.msra.mxu3 %v220_v2  ;;  %v355_v2 = vld [vmem:[#allocation5 + $0x300] sm:$0xff] }
 0x105   :  { %286 = vmatpush.msrb.mxu0 %v260_v35  ;;  %363 = vmatpush.msrb.mxu2 %v355_v2 }
 0x106   :  { %241 = vmatpush.msra.mxu3 %v219_v3  ;;  %v354_v3 = vld [vmem:[#allocation5 + $0x2f8] sm:$0xff] }
 0x107   :  { %287 = vmatpush.msrb.mxu0 %v259_v36  ;;  %364 = vmatpush.msrb.mxu2 %v354_v3 }
 0x108   :  { %242 = vmatpush.msra.mxu3 %v218_v4  ;;  %v353_v4 = vld [vmem:[#allocation5 + $0x2f0] sm:$0xff] }
 0x109   :  { %288 = vmatpush.msrb.mxu0 %v258_v37  ;;  %365 = vmatpush.msrb.mxu2 %v353_v4 }
 0x10a   :  { %243 = vmatpush.msra.mxu3 %v217_v12 }
 0x10b   :  { %289 = vmatpush.msrb.mxu0 %v257_v38 }
 0x10c   :  { %244 = vmatpush.msra.mxu3 %v216_v13 }
 0x10e   :  { %245 = vmatpush.msra.mxu3 %v215_v14 }
 0x110   :  { %246 = vmatpush.msra.mxu3 %v214_v15  ;;  %v298_v15 = vld [vmem:[#allocation8 + $0x20] sm:$0xff] }
 0x17f   :  { %v120_v47 = vpop.f32.mrf.mxu0 }
 0x180   :  { %v121_v48 = vadd.f32 %v120_v47, %v98_v46  ;;  %v309_v46 = vld [vmem:[#allocation5 + $0x268] sm:$0xff]  ;;  %v308_v47 = vld [vmem:[#allocation5 + $0x260] sm:$0xff] }
 0x181   :  { %323 = vmatpush.msrb.mxu1 %v309_v46 }
 0x182   :  { %v124_v49 = vmul.f32 0.01, %v121_v48  ;;  %vm123_vm4 = vcmp.ge.f32.partialorder %v121_v48, 0.0 }
 0x183   :  { %324 = vmatpush.msrb.mxu1 %v308_v47 }
 0x184   :  { %v125_v51 = vsel %vm123_vm4, %v121_v48, %v124_v49  ;;  %v307_v48 = vld [vmem:[#allocation5 + $0x258] sm:$0xff]  ;;  %v306_v49 = vld [vmem:[#allocation5 + $0x250] sm:$0xff] }
 0x185   :  { %v127_v52 = vmul.f32 %v126_v50, %v125_v51  ;;  %325 = vmatpush.msrb.mxu1 %v307_v48  ;;  %v305_v50 = vld [vmem:[#allocation5 + $0x248] sm:$0xff]  ;;  %v304_v51 = vld [vmem:[#allocation5 + $0x240] sm:$0xff] }
 0x187   :  { %161 = vmatmul.f32.vlgmr.msra.gmra.mxu1 %v127_v52  ;;  %v230_v52 = vperm.slane %v593_v43, 3 }
 0x188   :  { %326 = vmatpush.msrb.mxu1 %v306_v49 }
 0x18a   :  { %327 = vmatpush.msrb.mxu1 %v305_v50 }
 0x18c   :  { %328 = vmatpush.msrb.mxu1 %v304_v51 }
 0x18e   :  { %329 = vmatpush.msrb.mxu1 %v303_v59 }
 0x190   :  { %330 = vmatpush.msrb.mxu1 %v302_v60 }
 0x192   :  { %331 = vmatpush.msrb.mxu1 %v301_v61 }
 0x194   :  { %332 = vmatpush.msrb.mxu1 %v300_v62 }
 0x204   :  { %v162_v6 = vpop.f32.mrf.mxu1 }
 0x205   :  { %v163_v7 = vadd.f32 %v162_v6, %v144_v5  ;;  %v352_v5 = vld [vmem:[#allocation5 + $0x2e8] sm:$0xff]  ;;  %v351_v6 = vld [vmem:[#allocation5 + $0x2e0] sm:$0xff] }
 0x206   :  { %366 = vmatpush.msrb.mxu2 %v352_v5 }
 0x207   :  { %v166_v8 = vmul.f32 0.01, %v163_v7  ;;  %vm165_vm5 = vcmp.ge.f32.partialorder %v163_v7, 0.0 }
 0x208   :  { %367 = vmatpush.msrb.mxu2 %v351_v6 }
 0x209   :  { %v167_v10 = vsel %vm165_vm5, %v163_v7, %v166_v8  ;;  %v350_v7 = vld [vmem:[#allocation5 + $0x2d8] sm:$0xff]  ;;  %v349_v8 = vld [vmem:[#allocation5 + $0x2d0] sm:$0xff] }
 0x20a   :  { %v170_v11 = vmul.f32 %v169_v9, %v167_v10  ;;  %368 = vmatpush.msrb.mxu2 %v350_v7  ;;  %v348_v9 = vld [vmem:[#allocation5 + $0x2c8] sm:$0xff]  ;;  %v347_v10 = vld [vmem:[#allocation5 + $0x2c0] sm:$0xff] }
 0x20c   :  { %204 = vmatmul.f32.vlgmr.msra.gmra.mxu2 %v170_v11  ;;  %v273_v11 = vperm.slane %v593_v43, 4 }
 0x20d   :  { %369 = vmatpush.msrb.mxu2 %v349_v8 }
 0x20f   :  { %370 = vmatpush.msrb.mxu2 %v348_v9 }
 0x211   :  { %371 = vmatpush.msrb.mxu2 %v347_v10 }
 0x213   :  { %372 = vmatpush.msrb.mxu2 %v346_v18 }
 0x215   :  { %373 = vmatpush.msrb.mxu2 %v345_v19 }
 0x217   :  { %374 = vmatpush.msrb.mxu2 %v344_v20 }
 0x219   :  { %375 = vmatpush.msrb.mxu2 %v343_v21 }
 0x28f   :  { %v205_v29 = vpop.f32.mrf.mxu2 }
 0x290   :  { %v206_v30 = vadd.f32 %v205_v29, %v187_v28  ;;  %v359_v29 = vperm.slane %v593_v43, 6 }
 0x292   :  { %v209_v31 = vmul.f32 0.01, %v206_v30  ;;  %vm208_vm6 = vcmp.ge.f32.partialorder %v206_v30, 0.0 }
 0x294   :  { %v210_v33 = vsel %vm208_vm6, %v206_v30, %v209_v31 }
 0x295   :  { %v213_v34 = vmul.f32 %v212_v32, %v210_v33 }
 0x297   :  { %247 = vmatmul.f32.vlgmr.msra.gmra.mxu3 %v213_v34 }
 0x31a   :  { %v248_v53 = vpop.f32.mrf.mxu3 }
 0x31b   :  { %v249_v54 = vadd.f32 %v248_v53, %v230_v52 }
 0x31d   :  { %vm251_vm7 = vcmp.ge.f32.partialorder %v249_v54, 0.0  ;;  %v252_v55 = vmul.f32 0.01, %v249_v54 }
 0x31f   :  { %v253_v57 = vsel %vm251_vm7, %v249_v54, %v252_v55 }
 0x320   :  { %v256_v58 = vmul.f32 %v255_v56, %v253_v57 }
 0x322   :  { %290 = vmatmul.f32.vlgmr.msrb.gmra.mxu0 %v256_v58 }
 0x39f   :  { %v291_v12 = vpop.f32.mrf.mxu0 }
 0x3a0   :  { %v292_v13 = vadd.f32 %v291_v12, %v273_v11 }
 0x3a2   :  { %vm294_vm8 = vcmp.ge.f32.partialorder %v292_v13, 0.0  ;;  %v295_v14 = vmul.f32 0.01, %v292_v13 }
 0x3a4   :  { %v296_v16 = vsel %vm294_vm8, %v292_v13, %v295_v14 }
 0x3a5   :  { %v299_v17 = vmul.f32 %v298_v15, %v296_v16 }
 0x3a7   :  { %333 = vmatmul.f32.vlgmr.msrb.gmra.mxu1 %v299_v17 }
 0x424   :  { %v334_v23 = vpop.f32.mrf.mxu1 }
 0x425   :  { %v335_v24 = vadd.f32 %v334_v23, %v316_v22 }
 0x427   :  { %vm337_vm9 = vcmp.ge.f32.partialorder %v335_v24, 0.0  ;;  %v338_v25 = vmul.f32 0.01, %v335_v24 }
 0x429   :  { %v339_v27 = vsel %vm337_vm9, %v335_v24, %v338_v25 }
 0x42a   :  { %v342_v28 = vmul.f32 %v341_v26, %v339_v27 }
 0x42c   :  { %376 = vmatmul.f32.vlgmr.msrb.gmra.mxu2 %v342_v28 }
 0x4af   :  { %v377_v30 = vpop.f32.mrf.mxu2 }
 0x4b0   :  { %v378_v31 = vadd.f32 %v377_v30, %v359_v29 }
 0x4b2   :  { %380 = vst [vmem:[#allocation10] sm:$0xff] %v378_v31 }
 0x4b3   :  { %391 = dma.vmem_to_hbm [thread:$0]  %s387_s9, 128, %s389_s12, [#allocation4]  }
 0x4b4   :  { %544 = dma.done.wait [#allocation4], 128  }
 0x4b5   :  { %545 = vsyncadd [#allocation4], 4294967168 }
 0x4b6   :  { %396 = vsyncpa [#allocation3], 1 }
 0x4b7   :  { %397 = vsyncpa [#allocation6], 1 }
 0x4b8   :  { %398 = vsyncpa [#allocation9], 1 }
 0x4b9   :  { %399 = vsyncpa [#allocation4], 1 }

</bundles_post_ra>
